<compile_context>
chip_gen: v7x
topology: tpu7x:2x2x1
jax: 0.10.0
libtpu: 0.0.40
codegen_flags: <defaults>
</compile_context>

<pallas_src>
import jax
import jax.numpy as jnp
from jax.experimental import pallas as pl
from jax.experimental.pallas import tpu as pltpu


def soft_prompt_forward(soft_prompt, input_embeds, *, max_inflight_row_copies=2):
    """Equivalent of SoftPrompt.forward.

    soft_prompt:  (P, D)
    input_embeds: (B, S, D)
    returns:      (B, P + S, D) -- prompt broadcast over batch and concatenated
                  in front of the input along the sequence axis.
    """
    assert soft_prompt.ndim == 2 and input_embeds.ndim == 3
    P, D = soft_prompt.shape
    B, S, Dx = input_embeds.shape
    assert D == Dx, "embedding_dim mismatch"
    out_dtype = input_embeds.dtype
    # Match dtypes explicitly so the prompt is not silently downcast on store.
    soft_prompt = soft_prompt.astype(out_dtype)

    T = P + S
    # Degenerate shapes: nothing to copy.
    if B == 0 or T == 0 or D == 0:
        return jnp.zeros((B, T, D), dtype=out_dtype)

    # Static chunking of each row's bulk copy so several large DMAs can stream
    # concurrently within one grid step (remainder folded into leading chunks,
    # so every chunk is a single unconditional copy — no tail branch).
    n_chunks = 0
    bounds = []
    if S > 0:
        n_chunks = int(min(max(1, max_inflight_row_copies), S))
        base, rem = divmod(S, n_chunks)
        start = 0
        for c in range(n_chunks):
            size = base + (1 if c < rem else 0)
            bounds.append((start, size))
            start += size

    have_prompt = P > 0
    n_sems = n_chunks + (1 if have_prompt else 0)

    def kernel(prompt_hbm, x_hbm, out_hbm, sem):
        b = pl.program_id(0)

        copies = []
        # Bulk input rows: x[b, r0:r0+rn, :] -> out[b, P+r0 : P+r0+rn, :]
        # (HBM -> HBM, one descriptor per static chunk, all concurrent).
        for c, (r0, rn) in enumerate(bounds):
            copies.append(
                pltpu.make_async_copy(
                    x_hbm.at[b, pl.ds(r0, rn), :],
                    out_hbm.at[b, pl.ds(P + r0, rn), :],
                    sem.at[c],
                )
            )
        # Prompt rows: soft_prompt -> out[b, 0:P, :] (disjoint from the bulk
        # rows, so it streams concurrently with them).
        if have_prompt:
            copies.append(
                pltpu.make_async_copy(
                    prompt_hbm,
                    out_hbm.at[b, pl.ds(0, P), :],
                    sem.at[n_chunks],
                )
            )

        # Fire everything, then drain.  Draining inside the step keeps the
        # semaphore bookkeeping local to this grid step, which is required for
        # correctness when the batch axis is megacore-split on v7x.
        for cp in copies:
            cp.start()
        for cp in copies:
            cp.wait()

    out_shape = jax.ShapeDtypeStruct((B, T, D), out_dtype)
    return pl.pallas_call(
        kernel,
        out_shape=out_shape,
        grid_spec=pltpu.PrefetchScalarGridSpec(
            num_scalar_prefetch=0,
            grid=(B,),
            in_specs=[
                # Prompt and input both stay in HBM; everything moves by DMA.
                pl.BlockSpec(memory_space=pl.ANY),
                pl.BlockSpec(memory_space=pl.ANY),
            ],
            out_specs=pl.BlockSpec(memory_space=pl.ANY),
            scratch_shapes=[pltpu.SemaphoreType.DMA((max(1, n_sems),))],
        ),
        compiler_params=pltpu.CompilerParams(
            dimension_semantics=("parallel",),
        ),
    )(soft_prompt, input_embeds)


if __name__ == "__main__":
    key = jax.random.PRNGKey(0)
    k_prompt, k_x = jax.random.split(key)

    # Small but TPU-friendly demo shapes:
    #   P = 8   -> sublane-aligned concat offset
    #   D = 128 -> lane-dense rows
    prompt_length = 8
    embedding_dim = 128
    batch = 2
    seq = 16

    soft_prompt = jax.random.normal(
        k_prompt, (prompt_length, embedding_dim), dtype=jnp.float32
    )
    input_embeds = jax.random.normal(
        k_x, (batch, seq, embedding_dim), dtype=jnp.float32
    )

    ref = jnp.concatenate(
        [
            jnp.broadcast_to(
                soft_prompt[None], (batch, prompt_length, embedding_dim)
            ),
            input_embeds,
        ],
        axis=1,
    )

    # Default: 2 concurrent bulk chunks per row (8 rows each) + prompt DMA.
    out = soft_prompt_forward(soft_prompt, input_embeds)
    out = jax.block_until_ready(out)
    assert out.shape == (batch, prompt_length + seq, embedding_dim)
    assert jnp.allclose(out, ref), "mismatch vs reference (2 chunks/row)"

    # Exercise an uneven static chunk split (16 rows -> 6 + 5 + 5).
    out2 = soft_prompt_forward(soft_prompt, input_embeds, max_inflight_row_copies=3)
    out2 = jax.block_until_ready(out2)
    assert jnp.allclose(out2, ref), "mismatch vs reference (3 chunks/row)"

    # Exercise the single-DMA-per-row path.
    out3 = soft_prompt_forward(soft_prompt, input_embeds, max_inflight_row_copies=1)
    out3 = jax.block_until_ready(out3)
    assert jnp.allclose(out3, ref), "mismatch vs reference (1 chunk/row)"

    print("KERNEL_OK")
</pallas_src>

<mosaic_0001>
module attributes {stable_mosaic.version = 11 : i64} {
  func.func @kernel(%arg0: i32, %arg1: memref<8x128xf32, #tpu.memory_space<any>>, %arg2: memref<2x16x128xf32, #tpu.memory_space<any>>, %arg3: memref<2x24x128xf32, #tpu.memory_space<any>>, %arg4: memref<3x!tpu.dma_semaphore, #tpu.memory_space<semaphore_mem>>) attributes {dimension_semantics = [#tpu.dimension_semantics<parallel>], iteration_bounds = array<i64: 2>, scalar_prefetch = 0 : i64, scratch_operands = 1 : i64, tpu.core_type = #tpu.core_type<tc>, window_params = [{}, {}, {}]} {
    %c0_i32 = arith.constant 0 : i32
    %c0_i32_0 = arith.constant 0 : i32
    %c0_i32_1 = arith.constant 0 : i32
    %0 = tpu.memref_slice %arg2[%arg0, %c0_i32_0, %c0_i32_1] : memref<2x16x128xf32, #tpu.memory_space<any>> -> memref<1x8x128xf32, #tpu.memory_space<any>>
    %1 = tpu.memref_squeeze %0 : memref<1x8x128xf32, #tpu.memory_space<any>> -> memref<8x128xf32, #tpu.memory_space<any>>
    %c8_i32 = arith.constant 8 : i32
    %c0_i32_2 = arith.constant 0 : i32
    %2 = tpu.memref_slice %arg3[%arg0, %c8_i32, %c0_i32_2] : memref<2x24x128xf32, #tpu.memory_space<any>> -> memref<1x8x128xf32, #tpu.memory_space<any>>
    %3 = tpu.memref_squeeze %2 : memref<1x8x128xf32, #tpu.memory_space<any>> -> memref<8x128xf32, #tpu.memory_space<any>>
    %4 = tpu.memref_slice %arg4[%c0_i32] : memref<3x!tpu.dma_semaphore, #tpu.memory_space<semaphore_mem>> -> memref<1x!tpu.dma_semaphore, #tpu.memory_space<semaphore_mem>>
    %5 = tpu.memref_squeeze %4 : memref<1x!tpu.dma_semaphore, #tpu.memory_space<semaphore_mem>> -> memref<!tpu.dma_semaphore, #tpu.memory_space<semaphore_mem>>
    tpu.enqueue_dma source(%1 : memref<8x128xf32, #tpu.memory_space<any>>) target(%3 : memref<8x128xf32, #tpu.memory_space<any>>) target_semaphore(%5 : memref<!tpu.dma_semaphore, #tpu.memory_space<semaphore_mem>>)
    %c1_i32 = arith.constant 1 : i32
    %c8_i32_3 = arith.constant 8 : i32
    %c0_i32_4 = arith.constant 0 : i32
    %6 = tpu.memref_slice %arg2[%arg0, %c8_i32_3, %c0_i32_4] : memref<2x16x128xf32, #tpu.memory_space<any>> -> memref<1x8x128xf32, #tpu.memory_space<any>>
    %7 = tpu.memref_squeeze %6 : memref<1x8x128xf32, #tpu.memory_space<any>> -> memref<8x128xf32, #tpu.memory_space<any>>
    %c16_i32 = arith.constant 16 : i32
    %c0_i32_5 = arith.constant 0 : i32
    %8 = tpu.memref_slice %arg3[%arg0, %c16_i32, %c0_i32_5] : memref<2x24x128xf32, #tpu.memory_space<any>> -> memref<1x8x128xf32, #tpu.memory_space<any>>
    %9 = tpu.memref_squeeze %8 : memref<1x8x128xf32, #tpu.memory_space<any>> -> memref<8x128xf32, #tpu.memory_space<any>>
    %10 = tpu.memref_slice %arg4[%c1_i32] : memref<3x!tpu.dma_semaphore, #tpu.memory_space<semaphore_mem>> -> memref<1x!tpu.dma_semaphore, #tpu.memory_space<semaphore_mem>>
    %11 = tpu.memref_squeeze %10 : memref<1x!tpu.dma_semaphore, #tpu.memory_space<semaphore_mem>> -> memref<!tpu.dma_semaphore, #tpu.memory_space<semaphore_mem>>
    tpu.enqueue_dma source(%7 : memref<8x128xf32, #tpu.memory_space<any>>) target(%9 : memref<8x128xf32, #tpu.memory_space<any>>) target_semaphore(%11 : memref<!tpu.dma_semaphore, #tpu.memory_space<semaphore_mem>>)
    %c2_i32 = arith.constant 2 : i32
    %c0_i32_6 = arith.constant 0 : i32
    %c0_i32_7 = arith.constant 0 : i32
    %12 = tpu.memref_slice %arg3[%arg0, %c0_i32_6, %c0_i32_7] : memref<2x24x128xf32, #tpu.memory_space<any>> -> memref<1x8x128xf32, #tpu.memory_space<any>>
    %13 = tpu.memref_squeeze %12 : memref<1x8x128xf32, #tpu.memory_space<any>> -> memref<8x128xf32, #tpu.memory_space<any>>
    %14 = tpu.memref_slice %arg4[%c2_i32] : memref<3x!tpu.dma_semaphore, #tpu.memory_space<semaphore_mem>> -> memref<1x!tpu.dma_semaphore, #tpu.memory_space<semaphore_mem>>
    %15 = tpu.memref_squeeze %14 : memref<1x!tpu.dma_semaphore, #tpu.memory_space<semaphore_mem>> -> memref<!tpu.dma_semaphore, #tpu.memory_space<semaphore_mem>>
    tpu.enqueue_dma source(%arg1 : memref<8x128xf32, #tpu.memory_space<any>>) target(%13 : memref<8x128xf32, #tpu.memory_space<any>>) target_semaphore(%15 : memref<!tpu.dma_semaphore, #tpu.memory_space<semaphore_mem>>)
    %c0_i32_8 = arith.constant 0 : i32
    %c0_i32_9 = arith.constant 0 : i32
    %c0_i32_10 = arith.constant 0 : i32
    %16 = tpu.memref_slice %arg2[%arg0, %c0_i32_9, %c0_i32_10] : memref<2x16x128xf32, #tpu.memory_space<any>> -> memref<1x8x128xf32, #tpu.memory_space<any>>
    %17 = tpu.memref_squeeze %16 : memref<1x8x128xf32, #tpu.memory_space<any>> -> memref<8x128xf32, #tpu.memory_space<any>>
    %c8_i32_11 = arith.constant 8 : i32
    %c0_i32_12 = arith.constant 0 : i32
    %18 = tpu.memref_slice %arg3[%arg0, %c8_i32_11, %c0_i32_12] : memref<2x24x128xf32, #tpu.memory_space<any>> -> memref<1x8x128xf32, #tpu.memory_space<any>>
    %19 = tpu.memref_squeeze %18 : memref<1x8x128xf32, #tpu.memory_space<any>> -> memref<8x128xf32, #tpu.memory_space<any>>
    %20 = tpu.memref_slice %arg4[%c0_i32_8] : memref<3x!tpu.dma_semaphore, #tpu.memory_space<semaphore_mem>> -> memref<1x!tpu.dma_semaphore, #tpu.memory_space<semaphore_mem>>
    %21 = tpu.memref_squeeze %20 : memref<1x!tpu.dma_semaphore, #tpu.memory_space<semaphore_mem>> -> memref<!tpu.dma_semaphore, #tpu.memory_space<semaphore_mem>>
    tpu.wait_dma2 semaphore(%21 : memref<!tpu.dma_semaphore, #tpu.memory_space<semaphore_mem>>) src(%17 : memref<8x128xf32, #tpu.memory_space<any>>) dst(%19 : memref<8x128xf32, #tpu.memory_space<any>>)
    %c1_i32_13 = arith.constant 1 : i32
    %c8_i32_14 = arith.constant 8 : i32
    %c0_i32_15 = arith.constant 0 : i32
    %22 = tpu.memref_slice %arg2[%arg0, %c8_i32_14, %c0_i32_15] : memref<2x16x128xf32, #tpu.memory_space<any>> -> memref<1x8x128xf32, #tpu.memory_space<any>>
    %23 = tpu.memref_squeeze %22 : memref<1x8x128xf32, #tpu.memory_space<any>> -> memref<8x128xf32, #tpu.memory_space<any>>
    %c16_i32_16 = arith.constant 16 : i32
    %c0_i32_17 = arith.constant 0 : i32
    %24 = tpu.memref_slice %arg3[%arg0, %c16_i32_16, %c0_i32_17] : memref<2x24x128xf32, #tpu.memory_space<any>> -> memref<1x8x128xf32, #tpu.memory_space<any>>
    %25 = tpu.memref_squeeze %24 : memref<1x8x128xf32, #tpu.memory_space<any>> -> memref<8x128xf32, #tpu.memory_space<any>>
    %26 = tpu.memref_slice %arg4[%c1_i32_13] : memref<3x!tpu.dma_semaphore, #tpu.memory_space<semaphore_mem>> -> memref<1x!tpu.dma_semaphore, #tpu.memory_space<semaphore_mem>>
    %27 = tpu.memref_squeeze %26 : memref<1x!tpu.dma_semaphore, #tpu.memory_space<semaphore_mem>> -> memref<!tpu.dma_semaphore, #tpu.memory_space<semaphore_mem>>
    tpu.wait_dma2 semaphore(%27 : memref<!tpu.dma_semaphore, #tpu.memory_space<semaphore_mem>>) src(%23 : memref<8x128xf32, #tpu.memory_space<any>>) dst(%25 : memref<8x128xf32, #tpu.memory_space<any>>)
    %c2_i32_18 = arith.constant 2 : i32
    %c0_i32_19 = arith.constant 0 : i32
    %c0_i32_20 = arith.constant 0 : i32
    %28 = tpu.memref_slice %arg3[%arg0, %c0_i32_19, %c0_i32_20] : memref<2x24x128xf32, #tpu.memory_space<any>> -> memref<1x8x128xf32, #tpu.memory_space<any>>
    %29 = tpu.memref_squeeze %28 : memref<1x8x128xf32, #tpu.memory_space<any>> -> memref<8x128xf32, #tpu.memory_space<any>>
    %30 = tpu.memref_slice %arg4[%c2_i32_18] : memref<3x!tpu.dma_semaphore, #tpu.memory_space<semaphore_mem>> -> memref<1x!tpu.dma_semaphore, #tpu.memory_space<semaphore_mem>>
    %31 = tpu.memref_squeeze %30 : memref<1x!tpu.dma_semaphore, #tpu.memory_space<semaphore_mem>> -> memref<!tpu.dma_semaphore, #tpu.memory_space<semaphore_mem>>
    tpu.wait_dma2 semaphore(%31 : memref<!tpu.dma_semaphore, #tpu.memory_space<semaphore_mem>>) src(%arg1 : memref<8x128xf32, #tpu.memory_space<any>>) dst(%29 : memref<8x128xf32, #tpu.memory_space<any>>)
    return
  }
}

</mosaic_0001>

<bundles_post_ra>
// kernel: tpu_custom_call.1
= control target key start
LH: loop header
LB: loop body
LE: loop exit
PB: predicated region body
PF: predicated region fallthrough
CT: control target
= control target key end

     0   :  { %s182_s9 = smov 0   ;;  %s196_s0 = inlined_call_operand.hbm [shape: f32[8,128], index: 0, kind: input, shape index: {}]   ;;  %s197_s1 = inlined_call_operand.hbm [shape: f32[2,16,128], index: 1, kind: input, shape index: {}]   ;;  %s198_s2 = inlined_call_operand.hbm [shape: f32[2,24,128], index: 2, kind: output, shape index: {}]  }
   0x1 LB: > { %s128_s10 = sshll.u32 %s158_s9, 8  ;;  %s120_s11 = smul.u32 384, %s158_s9  ;;  %s158_s9 = sphi %s182_s9, %s12_s9  }
   0x2   : > { %s16_s14 = scalar_lea.hbm %s197_s1, %s128_s10  ;;  %s160_s21 = smov [#allocation2]  }
   0x3   : > { %s101_s17 = scalar_lea.hbm %s198_s2, %s120_s11  ;;  %s106_s18 = scalar_lea.hbm %s16_s14, 128 }
   0x4   : > { %s102_s19 = scalar_lea.hbm %s101_s17, 128  ;;  %s110_s20 = scalar_lea.hbm %s101_s17, 256 }
   0x5   : > { %s161_s22 = smov [#allocation3]   ;;  %s162_s23 = smov 0  }
   0x6   : > { %33 = dma.general %s16_s14, 128, %s102_s19, %s160_s21, %s161_s22, [#allocation4], %s162_s23, 0  }
   0x7   : > { %s163_s24 = smov [#allocation2 + $0x1]   ;;  %s164_s25 = smov [#allocation5]  }
   0x8   : > { %53 = dma.general %s106_s18, 128, %s110_s20, %s163_s24, %s164_s25, [#allocation6], %s162_s23, 0  }
   0x9   : > { %s165_s26 = smov [#allocation2 + $0x2]   ;;  %s166_s27 = smov [#allocation7]  }
   0xa   : > { %69 = dma.general %s196_s0, 128, %s101_s17, %s165_s26, %s166_s27, [#allocation8], %s162_s23, 0  }
   0xb   : > { %150 = dma.done.wait [#allocation2], 128 }
   0xc   : > { %151 = vsyncadd [#allocation2], 4294967168 }
   0xd   : > { %152 = dma.done.wait [#allocation2 + $0x1], 128 }
   0xe   : > { %153 = vsyncadd [#allocation2 + $0x1], 4294967168 }
   0xf   : > { %154 = dma.done.wait [#allocation2 + $0x2], 128 }
  0x10   : > { %155 = vsyncadd [#allocation2 + $0x2], 4294967168  ;;  %s12_s9 = sadd.s32 1, %s158_s9  }
  0x11   : > { %p9_p0 = scmp.ge.s32.totalorder %s12_s9, 2  }
  0x13   :  { %11 = sbr.rel (!%p9_p0) target bundleno = 1 (0x1), region = 28 }
  0x1a   :  { %77 = vsyncmov [#allocation2] }
  0x1d   :  { %s78_s30 = vpop.sfrf %77 }
  0x1e   :  { %p125_p1 = scmp.ne.s32.totalorder %s78_s30, 0 }
  0x20   :  { %82 = shalt.err (%p125_p1)  }
  0x21   :  { %84 = vsyncmov [#allocation2 + $0x1] }
  0x24   :  { %s85_s3 = vpop.sfrf %84 }
  0x25   :  { %p126_p2 = scmp.ne.s32.totalorder %s85_s3, 0 }
  0x27   :  { %89 = shalt.err (%p126_p2)  }
  0x28   :  { %91 = vsyncmov [#allocation2 + $0x2] }
  0x2b   :  { %s92_s4 = vpop.sfrf %91 }
  0x2c   :  { %p127_p3 = scmp.ne.s32.totalorder %s92_s4, 0 }
  0x2e   :  { %96 = shalt.err (%p127_p3)  }

</bundles_post_ra>
